<compile_context>
chip_gen: v6e
topology: v6e:2x2x1
jax: 0.10.0
libtpu: 0.0.40
codegen_flags: <defaults>
</compile_context>

<pallas_src>
import functools

import jax
import jax.numpy as jnp
from jax.experimental import pallas as pl
from jax.experimental.pallas import tpu as pltpu

IN_DIM = 28 * 28          # 784 (logical feature dim; kernel I/O width)
HID_DIM = 256
LATENT_DIM = 64           # logical latent dim
LATENT_PAD = 128          # padded latent dim (full MXU lane width)

DEFAULT_BLOCK_B = 1024    # batch tile cap (rows); multiple of 8


def _autoencoder_kernel(x_ref,
                        w1_ref, b1_ref,
                        w2_ref, b2_ref,
                        w3_ref, b3_ref,
                        w4_ref, b4_ref,
                        out_ref):
    """Fused forward: Linear+ReLU, Linear, Linear+ReLU, Linear+Sigmoid.

    x arrives as f32 and is cast to bf16 in-kernel (MXU inputs); weights are
    bf16; accumulation, bias adds, ReLU and sigmoid run in f32.  Output is
    stored as f32 at the logical width 784.
    """
    x = x_ref[...].astype(jnp.bfloat16)                           # (TB, 784)

    # encoder: Linear(784 -> 256) + ReLU
    h1 = jnp.dot(x, w1_ref[...], preferred_element_type=jnp.float32) + b1_ref[...]
    h1 = jnp.maximum(h1, 0.0).astype(jnp.bfloat16)                # (TB, 256)

    # encoder: Linear(256 -> latent[128-padded])
    z = jnp.dot(h1, w2_ref[...], preferred_element_type=jnp.float32) + b2_ref[...]
    z = z.astype(jnp.bfloat16)                                    # (TB, 128)

    # decoder: Linear(latent -> 256) + ReLU
    h2 = jnp.dot(z, w3_ref[...], preferred_element_type=jnp.float32) + b3_ref[...]
    h2 = jnp.maximum(h2, 0.0).astype(jnp.bfloat16)                # (TB, 256)

    # decoder: Linear(256 -> 784) + Sigmoid
    y = jnp.dot(h2, w4_ref[...], preferred_element_type=jnp.float32) + b4_ref[...]
    out_ref[...] = jax.nn.sigmoid(y)                              # (TB, 784) f32


def _prepare_params(params):
    """Cast weights to bf16, keep biases f32, zero-pad only the latent dim.

    Zero-padding is semantics-preserving: padded latent lanes come from zero
    w2 columns / zero b2 entries and feed zero w3 rows, so they contribute
    nothing downstream.  w1/b1/w4/b4 stay at their logical shapes so the
    kernel's input and output tiles are exactly 784 wide.
    """
    (w1, b1), (w2, b2), (w3, b3), (w4, b4) = params

    w1p = w1.astype(jnp.bfloat16)                                           # (784, 256)
    b1p = b1.astype(jnp.float32)                                            # (1, 256)

    w2p = jnp.pad(w2, ((0, 0), (0, LATENT_PAD - LATENT_DIM))).astype(jnp.bfloat16)  # (256, 128)
    b2p = jnp.pad(b2, ((0, 0), (0, LATENT_PAD - LATENT_DIM))).astype(jnp.float32)   # (1, 128)

    w3p = jnp.pad(w3, ((0, LATENT_PAD - LATENT_DIM), (0, 0))).astype(jnp.bfloat16)  # (128, 256)
    b3p = b3.astype(jnp.float32)                                            # (1, 256)

    w4p = w4.astype(jnp.bfloat16)                                           # (256, 784)
    b4p = b4.astype(jnp.float32)                                            # (1, 784)

    return w1p, b1p, w2p, b2p, w3p, b3p, w4p, b4p


def autoencoder_forward(x_nchw, params, *, block_b=DEFAULT_BLOCK_B):
    """x_nchw: (B, 1, 28, 28) float32. Returns (B, 1, 28, 28) float32."""
    B = x_nchw.shape[0]
    x_flat = x_nchw.reshape(B, IN_DIM).astype(jnp.float32)        # nn.Flatten()

    # Adaptive batch tiling: minimize row padding for ragged batches while
    # capping the tile at block_b; tb is always a multiple of 8.
    n_tiles = max(1, pl.cdiv(B, block_b))
    tb = pl.cdiv(pl.cdiv(B, n_tiles), 8) * 8
    padded_b = n_tiles * tb
    if padded_b != B:                                             # small row pad only
        x_flat = jnp.pad(x_flat, ((0, padded_b - B), (0, 0)))
    grid = (n_tiles,)

    w1, b1, w2, b2, w3, b3, w4, b4 = _prepare_params(params)

    const = lambda shape: pl.BlockSpec(shape, lambda i: (0, 0))   # weights: VMEM-resident

    # Right-size the VMEM budget from the tile size (in/out double buffers,
    # weights, f32 intermediates); clamp to [32, 48] MiB -> safe on v7x (64 MiB
    # physical), ample on v5e/v6e (128 MiB).
    tile_io_bytes = tb * IN_DIM * 4
    vmem_limit = max(32 << 20, min(10 * tile_io_bytes, 48 << 20))

    out_pad = pl.pallas_call(
        _autoencoder_kernel,
        out_shape=jax.ShapeDtypeStruct((padded_b, IN_DIM), jnp.float32),
        grid=grid,
        in_specs=[
            pl.BlockSpec((tb, IN_DIM), lambda i: (i, 0)),         # x (batch-tiled, f32)
            const((IN_DIM, HID_DIM)),                             # w1
            const((1, HID_DIM)),                                  # b1
            const((HID_DIM, LATENT_PAD)),                         # w2
            const((1, LATENT_PAD)),                               # b2
            const((LATENT_PAD, HID_DIM)),                         # w3
            const((1, HID_DIM)),                                  # b3
            const((HID_DIM, IN_DIM)),                             # w4
            const((1, IN_DIM)),                                   # b4
        ],
        out_specs=pl.BlockSpec((tb, IN_DIM), lambda i: (i, 0)),
        compiler_params=pltpu.CompilerParams(
            dimension_semantics=("parallel",),                    # megacore on v7x
            vmem_limit_bytes=int(vmem_limit),
        ),
    )(x_flat, w1, b1, w2, b2, w3, b3, w4, b4)

    out = out_pad if padded_b == B else out_pad[:B]
    return out.reshape(B, 1, 28, 28)                              # nn.Unflatten(1,(1,28,28))


def init_params(key):
    """Deterministic init. PyTorch nn.Linear stores weight as (out, in) and
    computes x @ W.T + b; we pre-transpose to (in, out) for the kernel.
    Uses PyTorch-style uniform(-1/sqrt(fan_in), 1/sqrt(fan_in)) bounds."""
    def linear(k, fan_in, fan_out):
        kw, kb = jax.random.split(k)
        bound = 1.0 / jnp.sqrt(fan_in)
        w = jax.random.uniform(kw, (fan_in, fan_out), jnp.float32, -bound, bound)
        b = jax.random.uniform(kb, (1, fan_out), jnp.float32, -bound, bound)
        return w, b

    k1, k2, k3, k4 = jax.random.split(key, 4)
    return (
        linear(k1, IN_DIM, HID_DIM),       # encoder Linear(784, 256)
        linear(k2, HID_DIM, LATENT_DIM),   # encoder Linear(256, 64)
        linear(k3, LATENT_DIM, HID_DIM),   # decoder Linear(64, 256)
        linear(k4, HID_DIM, IN_DIM),       # decoder Linear(256, 784)
    )


def _reference_forward(x_nchw, params):
    """Pure-JAX f32 reference matching PyTorch semantics."""
    B = x_nchw.shape[0]
    x = x_nchw.reshape(B, IN_DIM)
    (w1, b1), (w2, b2), (w3, b3), (w4, b4) = params
    h = jnp.maximum(x @ w1 + b1, 0.0)
    z = h @ w2 + b2
    h = jnp.maximum(z @ w3 + b3, 0.0)
    y = jax.nn.sigmoid(h @ w4 + b4)
    return y.reshape(B, 1, 28, 28)


if __name__ == "__main__":
    key = jax.random.PRNGKey(0)
    k_params, k_x = jax.random.split(key)

    params = init_params(k_params)
    x = jax.random.uniform(k_x, (2, 1, 28, 28), jnp.float32)     # batch=2, MNIST-like

    fwd = functools.partial(autoencoder_forward, params=params)
    out = jax.block_until_ready(fwd(x))
    ref = jax.block_until_ready(_reference_forward(x, params))

    assert out.shape == (2, 1, 28, 28), out.shape
    # bf16 matmul inputs with f32 accumulation: loosened tolerance vs f32 reference.
    assert jnp.allclose(out, ref, atol=2e-2, rtol=0.0), "mismatch vs reference"
    print("KERNEL_OK")
</pallas_src>

<mosaic_0001>
module attributes {stable_mosaic.version = 11 : i64} {
  func.func @_autoencoder_kernel(%arg0: i32, %arg1: memref<8x784xf32, #tpu.memory_space<vmem>>, %arg2: memref<784x256xbf16, #tpu.memory_space<vmem>>, %arg3: memref<1x256xf32, #tpu.memory_space<vmem>>, %arg4: memref<256x128xbf16, #tpu.memory_space<vmem>>, %arg5: memref<1x128xf32, #tpu.memory_space<vmem>>, %arg6: memref<128x256xbf16, #tpu.memory_space<vmem>>, %arg7: memref<1x256xf32, #tpu.memory_space<vmem>>, %arg8: memref<256x784xbf16, #tpu.memory_space<vmem>>, %arg9: memref<1x784xf32, #tpu.memory_space<vmem>>, %arg10: memref<8x784xf32, #tpu.memory_space<vmem>>) attributes {dimension_semantics = [#tpu.dimension_semantics<parallel>], iteration_bounds = array<i64: 1>, scalar_prefetch = 0 : i64, scratch_operands = 0 : i64, tpu.core_type = #tpu.core_type<tc>, window_params = [{transform_indices = @transform_0, window_bounds = array<i64: 8, 784>}, {pipeline_mode = #tpu.pipeline_mode<synchronous>, transform_indices = @transform_1, window_bounds = array<i64: 784, 256>}, {pipeline_mode = #tpu.pipeline_mode<synchronous>, transform_indices = @transform_2, window_bounds = array<i64: 1, 256>}, {pipeline_mode = #tpu.pipeline_mode<synchronous>, transform_indices = @transform_3, window_bounds = array<i64: 256, 128>}, {pipeline_mode = #tpu.pipeline_mode<synchronous>, transform_indices = @transform_4, window_bounds = array<i64: 1, 128>}, {pipeline_mode = #tpu.pipeline_mode<synchronous>, transform_indices = @transform_5, window_bounds = array<i64: 128, 256>}, {pipeline_mode = #tpu.pipeline_mode<synchronous>, transform_indices = @transform_6, window_bounds = array<i64: 1, 256>}, {pipeline_mode = #tpu.pipeline_mode<synchronous>, transform_indices = @transform_7, window_bounds = array<i64: 256, 784>}, {pipeline_mode = #tpu.pipeline_mode<synchronous>, transform_indices = @transform_8, window_bounds = array<i64: 1, 784>}, {transform_indices = @transform_9, window_bounds = array<i64: 8, 784>}]} {
    %c0 = arith.constant 0 : index
    %c0_0 = arith.constant 0 : index
    %0 = vector.load %arg1[%c0, %c0_0] : memref<8x784xf32, #tpu.memory_space<vmem>>, vector<8x784xf32>
    %1 = arith.truncf %0 : vector<8x784xf32> to vector<8x784xbf16>
    %c0_1 = arith.constant 0 : index
    %c0_2 = arith.constant 0 : index
    %2 = vector.load %arg2[%c0_1, %c0_2] : memref<784x256xbf16, #tpu.memory_space<vmem>>, vector<784x256xbf16>
    %cst = arith.constant dense<0.000000e+00> : vector<8x256xf32>
    %3 = tpu.matmul %1, %2, %cst {dimension_numbers = #tpu.dot_dimension_numbers<[1], [0], [0], [1], [0, 0, 1, 1], [], []>} : vector<8x784xbf16>, vector<784x256xbf16>, vector<8x256xf32> -> vector<8x256xf32>
    %c0_3 = arith.constant 0 : index
    %c0_4 = arith.constant 0 : index
    %4 = vector.load %arg3[%c0_3, %c0_4] : memref<1x256xf32, #tpu.memory_space<vmem>>, vector<1x256xf32>
    %5 = vector.broadcast %4 : vector<1x256xf32> to vector<8x256xf32>
    %6 = arith.addf %3, %5 : vector<8x256xf32>
    %cst_5 = arith.constant 0.000000e+00 : f32
    %7 = vector.broadcast %cst_5 : f32 to vector<8x256xf32>
    %8 = arith.maximumf %6, %7 : vector<8x256xf32>
    %9 = arith.truncf %8 : vector<8x256xf32> to vector<8x256xbf16>
    %c0_6 = arith.constant 0 : index
    %c0_7 = arith.constant 0 : index
    %10 = vector.load %arg4[%c0_6, %c0_7] : memref<256x128xbf16, #tpu.memory_space<vmem>>, vector<256x128xbf16>
    %cst_8 = arith.constant dense<0.000000e+00> : vector<8x128xf32>
    %11 = tpu.matmul %9, %10, %cst_8 {dimension_numbers = #tpu.dot_dimension_numbers<[1], [0], [0], [1], [0, 0, 1, 1], [], []>} : vector<8x256xbf16>, vector<256x128xbf16>, vector<8x128xf32> -> vector<8x128xf32>
    %c0_9 = arith.constant 0 : index
    %c0_10 = arith.constant 0 : index
    %12 = vector.load %arg5[%c0_9, %c0_10] : memref<1x128xf32, #tpu.memory_space<vmem>>, vector<1x128xf32>
    %13 = vector.broadcast %12 : vector<1x128xf32> to vector<8x128xf32>
    %14 = arith.addf %11, %13 : vector<8x128xf32>
    %15 = arith.truncf %14 : vector<8x128xf32> to vector<8x128xbf16>
    %c0_11 = arith.constant 0 : index
    %c0_12 = arith.constant 0 : index
    %16 = vector.load %arg6[%c0_11, %c0_12] : memref<128x256xbf16, #tpu.memory_space<vmem>>, vector<128x256xbf16>
    %cst_13 = arith.constant dense<0.000000e+00> : vector<8x256xf32>
    %17 = tpu.matmul %15, %16, %cst_13 {dimension_numbers = #tpu.dot_dimension_numbers<[1], [0], [0], [1], [0, 0, 1, 1], [], []>} : vector<8x128xbf16>, vector<128x256xbf16>, vector<8x256xf32> -> vector<8x256xf32>
    %c0_14 = arith.constant 0 : index
    %c0_15 = arith.constant 0 : index
    %18 = vector.load %arg7[%c0_14, %c0_15] : memref<1x256xf32, #tpu.memory_space<vmem>>, vector<1x256xf32>
    %19 = vector.broadcast %18 : vector<1x256xf32> to vector<8x256xf32>
    %20 = arith.addf %17, %19 : vector<8x256xf32>
    %cst_16 = arith.constant 0.000000e+00 : f32
    %21 = vector.broadcast %cst_16 : f32 to vector<8x256xf32>
    %22 = arith.maximumf %20, %21 : vector<8x256xf32>
    %23 = arith.truncf %22 : vector<8x256xf32> to vector<8x256xbf16>
    %c0_17 = arith.constant 0 : index
    %c0_18 = arith.constant 0 : index
    %24 = vector.load %arg8[%c0_17, %c0_18] : memref<256x784xbf16, #tpu.memory_space<vmem>>, vector<256x784xbf16>
    %cst_19 = arith.constant dense<0.000000e+00> : vector<8x784xf32>
    %25 = tpu.matmul %23, %24, %cst_19 {dimension_numbers = #tpu.dot_dimension_numbers<[1], [0], [0], [1], [0, 0, 1, 1], [], []>} : vector<8x256xbf16>, vector<256x784xbf16>, vector<8x784xf32> -> vector<8x784xf32>
    %c0_20 = arith.constant 0 : index
    %c0_21 = arith.constant 0 : index
    %26 = vector.load %arg9[%c0_20, %c0_21] : memref<1x784xf32, #tpu.memory_space<vmem>>, vector<1x784xf32>
    %27 = vector.broadcast %26 : vector<1x784xf32> to vector<8x784xf32>
    %28 = arith.addf %25, %27 : vector<8x784xf32>
    %29 = arith.negf %28 : vector<8x784xf32>
    %30 = math.exp %29 : vector<8x784xf32>
    %cst_22 = arith.constant 1.000000e+00 : f32
    %31 = vector.broadcast %cst_22 : f32 to vector<8x784xf32>
    %32 = arith.addf %31, %30 : vector<8x784xf32>
    %33 = arith.divf %31, %32 : vector<8x784xf32>
    %c0_23 = arith.constant 0 : index
    %c0_24 = arith.constant 0 : index
    %34 = vector.load %arg10[%c0_23, %c0_24] : memref<8x784xf32, #tpu.memory_space<vmem>>, vector<8x784xf32>
    tpu.vector_store %arg10[%c0_23, %c0_24], %33 {strides = array<i32>} : memref<8x784xf32, #tpu.memory_space<vmem>>, vector<8x784xf32>,
    return
  }
  func.func @transform_0(%arg0: i32) -> (i32, i32) {
    %c0_i32 = arith.constant 0 : i32
    %c0_i32_0 = arith.constant 0 : i32
    return %arg0, %c0_i32 : i32, i32
  }
  func.func @transform_1(%arg0: i32) -> (i32, i32) {
    %c0_i32 = arith.constant 0 : i32
    %c0_i32_0 = arith.constant 0 : i32
    %c0_i32_1 = arith.constant 0 : i32
    return %c0_i32, %c0_i32_0 : i32, i32
  }
  func.func @transform_2(%arg0: i32) -> (i32, i32) {
    %c0_i32 = arith.constant 0 : i32
    %c0_i32_0 = arith.constant 0 : i32
    %c0_i32_1 = arith.constant 0 : i32
    return %c0_i32, %c0_i32_0 : i32, i32
  }
  func.func @transform_3(%arg0: i32) -> (i32, i32) {
    %c0_i32 = arith.constant 0 : i32
    %c0_i32_0 = arith.constant 0 : i32
    %c0_i32_1 = arith.constant 0 : i32
    return %c0_i32, %c0_i32_0 : i32, i32
  }
  func.func @transform_4(%arg0: i32) -> (i32, i32) {
    %c0_i32 = arith.constant 0 : i32
    %c0_i32_0 = arith.constant 0 : i32
    %c0_i32_1 = arith.constant 0 : i32
    return %c0_i32, %c0_i32_0 : i32, i32
  }
  func.func @transform_5(%arg0: i32) -> (i32, i32) {
    %c0_i32 = arith.constant 0 : i32
    %c0_i32_0 = arith.constant 0 : i32
    %c0_i32_1 = arith.constant 0 : i32
    return %c0_i32, %c0_i32_0 : i32, i32
  }
  func.func @transform_6(%arg0: i32) -> (i32, i32) {
    %c0_i32 = arith.constant 0 : i32
    %c0_i32_0 = arith.constant 0 : i32
    %c0_i32_1 = arith.constant 0 : i32
    return %c0_i32, %c0_i32_0 : i32, i32
  }
  func.func @transform_7(%arg0: i32) -> (i32, i32) {
    %c0_i32 = arith.constant 0 : i32
    %c0_i32_0 = arith.constant 0 : i32
    %c0_i32_1 = arith.constant 0 : i32
    return %c0_i32, %c0_i32_0 : i32, i32
  }
  func.func @transform_8(%arg0: i32) -> (i32, i32) {
    %c0_i32 = arith.constant 0 : i32
    %c0_i32_0 = arith.constant 0 : i32
    %c0_i32_1 = arith.constant 0 : i32
    return %c0_i32, %c0_i32_0 : i32, i32
  }
  func.func @transform_9(%arg0: i32) -> (i32, i32) {
    %c0_i32 = arith.constant 0 : i32
    %c0_i32_0 = arith.constant 0 : i32
    return %arg0, %c0_i32 : i32, i32
  }
}

</mosaic_0001>

<bundles_post_ra>
// kernel: tpu_custom_call.1
= control target key start
LH: loop header
LB: loop body
LE: loop exit
PB: predicated region body
PF: predicated region fallthrough
CT: control target
= control target key end

     0   :  { %vm648_vm0 = vcmask 130048   ;;  %s3653_s0 = inlined_call_operand.vmem [shape: f32[8,784], index: 0, kind: input, shape index: {}]   ;;  %s3654_s1 = inlined_call_operand.vmem [shape: bf16[784,256], index: 1, kind: input, shape index: {}]   ;;  %s3655_s2 = inlined_call_operand.vmem [shape: f32[1,256], index: 2, kind: input, shape index: {}]   ;;  %s3656_s3 = inlined_call_operand.vmem [shape: bf16[256,128], index: 3, kind: input, shape index: {}]   ;;  %s3657_s4 = inlined_call_operand.vmem [shape: f32[1,128], index: 4, kind: input, shape index: {}]   ;;  %s3658_s5 = inlined_call_operand.vmem [shape: bf16[128,256], index: 5, kind: input, shape index: {}]   ;;  %s3659_s6 = inlined_call_operand.vmem [shape: f32[1,256], index: 6, kind: input, shape index: {}]   ;;  %s3660_s7 = inlined_call_operand.vmem [shape: bf16[256,784], index: 7, kind: input, shape index: {}]   ;;  %s3661_s8 = inlined_call_operand.vmem [shape: f32[1,784], index: 8, kind: input, shape index: {}]   ;;  %s3662_s9 = inlined_call_operand.hbm [shape: f32[8,784], index: 9, kind: output, shape index: {}]  }
   0x1   :  { %v2413_v0 = vld [vmem:[%s3654_s1 + $0x74] ss:$8 sps:$4 sm:$0xff]   ;;  %v2415_v1 = vld [vmem:[%s3654_s1 + $0x70] ss:$8 sps:$4 sm:$0xff]   ;;  %v2419_v4 = vld [vmem:[%s3654_s1 + $0x64] ss:$8 sps:$4 sm:$0xff]  }
   0x2   :  { %652 = vmatprep.subr.bf16.mxu0 %v2413_v0  ;;  %v2416_v2 = vld [vmem:[%s3654_s1 + $0x174] ss:$8 sps:$4 sm:$0xff]   ;;  %v2418_v3 = vld [vmem:[%s3654_s1 + $0x170] ss:$8 sps:$4 sm:$0xff]   ;;  %v2421_v5 = vld [vmem:[%s3654_s1 + $0x60] ss:$8 sps:$4 sm:$0xff]  }
   0x3   :  { %653 = vmatpush1.bf16.msra.mxu0 %v2415_v1  ;;  %693 = vmatprep.subr.bf16.mxu1 %v2416_v2  ;;  %v2422_v6 = vld [vmem:[%s3654_s1 + $0x164] ss:$8 sps:$4 sm:$0xff]   ;;  %v2424_v7 = vld [vmem:[%s3654_s1 + $0x160] ss:$8 sps:$4 sm:$0xff]   ;;  %v2425_v8 = vld [vmem:[%s3654_s1 + $0x54] ss:$8 sps:$4 sm:$0xff]  }
   0x4   :  { %694 = vmatpush1.bf16.msra.mxu1 %v2418_v3  ;;  %654 = vmatprep.subr.bf16.mxu0 %v2419_v4  ;;  %v2427_v9 = vld [vmem:[%s3654_s1 + $0x50] ss:$8 sps:$4 sm:$0xff]   ;;  %v2428_v10 = vld [vmem:[%s3654_s1 + $0x154] ss:$8 sps:$4 sm:$0xff]   ;;  %v2431_v11 = vld [vmem:[%s3654_s1 + $0x44] ss:$8 sps:$4 sm:$0xff]  }
   0x5   :  { %695 = vmatprep.subr.bf16.mxu1 %v2422_v6  ;;  %v2430_v12 = vld [vmem:[%s3654_s1 + $0x150] ss:$8 sps:$4 sm:$0xff]   ;;  %v2434_v13 = vld [vmem:[%s3654_s1 + $0x144] ss:$8 sps:$4 sm:$0xff]   ;;  %v2433_v14 = vld [vmem:[%s3654_s1 + $0x40] ss:$8 sps:$4 sm:$0xff]  }
   0x6   :  { %v2437_v15 = vld [vmem:[%s3654_s1 + $0x34] ss:$8 sps:$4 sm:$0xff]   ;;  %v2436_v16 = vld [vmem:[%s3654_s1 + $0x140] ss:$8 sps:$4 sm:$0xff]   ;;  %v2439_v18 = vld [vmem:[%s3654_s1 + $0x30] ss:$8 sps:$4 sm:$0xff]  }
   0x7   :  { %655 = vmatpush1.bf16.msra.mxu0 %v2421_v5  ;;  %v2440_v17 = vld [vmem:[%s3654_s1 + $0x134] ss:$8 sps:$4 sm:$0xff]   ;;  %v2443_v19 = vld [vmem:[%s3654_s1 + $0x24] ss:$8 sps:$4 sm:$0xff]   ;;  %v2442_v20 = vld [vmem:[%s3654_s1 + $0x130] ss:$8 sps:$4 sm:$0xff]  }
   0x8   :  { %656 = vmatprep.subr.bf16.mxu0 %v2425_v8  ;;  %696 = vmatpush1.bf16.msra.mxu1 %v2424_v7  ;;  %v2446_v21 = vld [vmem:[%s3654_s1 + $0x124] ss:$8 sps:$4 sm:$0xff]   ;;  %v2445_v22 = vld [vmem:[%s3654_s1 + $0x20] ss:$8 sps:$4 sm:$0xff]   ;;  %v2449_v23 = vld [vmem:[%s3654_s1 + $0x14] ss:$8 sps:$4 sm:$0xff]  }
   0x9   :  { %697 = vmatprep.subr.bf16.mxu1 %v2428_v10  ;;  %v2448_v24 = vld [vmem:[%s3654_s1 + $0x120] ss:$8 sps:$4 sm:$0xff]   ;;  %v2452_v25 = vld [vmem:[%s3654_s1 + $0x114] ss:$8 sps:$4 sm:$0xff]   ;;  %v2451_v26 = vld [vmem:[%s3654_s1 + $0x10] ss:$8 sps:$4 sm:$0xff]  }
   0xa   :  { %v2455_v27 = vld [vmem:[%s3654_s1 + $0x4] ss:$8 sps:$4 sm:$0xff]   ;;  %v2454_v28 = vld [vmem:[%s3654_s1 + $0x110] ss:$8 sps:$4 sm:$0xff]   ;;  %v2457_v30 = vld [vmem:[%s3654_s1] ss:$8 sps:$4 sm:$0xff]  }
   0xb   :  { %657 = vmatpush1.bf16.msra.mxu0 %v2427_v9  ;;  %v2458_v29 = vld [vmem:[%s3654_s1 + $0x104] ss:$8 sps:$4 sm:$0xff]   ;;  %v2461_v31 = vld [vmem:[%s3654_s1 + $0xf4] ss:$8 sps:$4 sm:$0xff]   ;;  %v2460_v32 = vld [vmem:[%s3654_s1 + $0x100] ss:$8 sps:$4 sm:$0xff]  }
   0xc   :  { %658 = vmatprep.subr.bf16.mxu0 %v2431_v11  ;;  %698 = vmatpush1.bf16.msra.mxu1 %v2430_v12  ;;  %v2464_v33 = vld [vmem:[%s3654_s1 + $0x1f4] ss:$8 sps:$4 sm:$0xff]   ;;  %v2463_v34 = vld [vmem:[%s3654_s1 + $0xf0] ss:$8 sps:$4 sm:$0xff]   ;;  %v2467_v35 = vld [vmem:[%s3654_s1 + $0xe4] ss:$8 sps:$4 sm:$0xff]  }
   0xd   :  { %699 = vmatprep.subr.bf16.mxu1 %v2434_v13  ;;  %v2466_v36 = vld [vmem:[%s3654_s1 + $0x1f0] ss:$8 sps:$4 sm:$0xff]   ;;  %v2470_v37 = vld [vmem:[%s3654_s1 + $0x1e4] ss:$8 sps:$4 sm:$0xff]   ;;  %v2469_v38 = vld [vmem:[%s3654_s1 + $0xe0] ss:$8 sps:$4 sm:$0xff]  }
   0xe   :  { %v2473_v39 = vld [vmem:[%s3654_s1 + $0xd4] ss:$8 sps:$4 sm:$0xff]   ;;  %v2472_v40 = vld [vmem:[%s3654_s1 + $0x1e0] ss:$8 sps:$4 sm:$0xff]   ;;  %v2475_v42 = vld [vmem:[%s3654_s1 + $0xd0] ss:$8 sps:$4 sm:$0xff]  }
   0xf   :  { %659 = vmatpush1.bf16.msra.mxu0 %v2433_v14  ;;  %v2476_v41 = vld [vmem:[%s3654_s1 + $0x1d4] ss:$8 sps:$4 sm:$0xff]   ;;  %v2479_v43 = vld [vmem:[%s3654_s1 + $0xc4] ss:$8 sps:$4 sm:$0xff]   ;;  %v2478_v44 = vld [vmem:[%s3654_s1 + $0x1d0] ss:$8 sps:$4 sm:$0xff]  }
  0x10   :  { %660 = vmatprep.subr.bf16.mxu0 %v2437_v15  ;;  %700 = vmatpush1.bf16.msra.mxu1 %v2436_v16  ;;  %v2482_v45 = vld [vmem:[%s3654_s1 + $0x1c4] ss:$8 sps:$4 sm:$0xff]   ;;  %v2481_v47 = vld [vmem:[%s3654_s1 + $0xc0] ss:$8 sps:$4 sm:$0xff]   ;;  %v2485_v49 = vld [vmem:[%s3654_s1 + $0xb4] ss:$8 sps:$4 sm:$0xff]  }
  0x11   :  { %701 = vmatprep.subr.bf16.mxu1 %v2440_v17  ;;  %v35_v46 = vld [vmem:[%s3653_s0 + $0x8] sm:$0xff]  ;;  %v37_v50 = vld [vmem:[%s3653_s0 + $0x18] sm:$0xff]  ;;  %v34_v4 = vld [vmem:[%s3653_s0] sm:$0xff] }
  0x12   :  { %v42_v48 = vpack.c.bf16 %v35_v46, %v35_v46  ;;  %v2484_v51 = vld [vmem:[%s3654_s1 + $0x1c0] ss:$8 sps:$4 sm:$0xff]   ;;  %v44_v52 = vpack.c.bf16 %v37_v50, %v37_v50  ;;  %v2488_v53 = vld [vmem:[%s3654_s1 + $0x1b4] ss:$8 sps:$4 sm:$0xff]   ;;  %v2487_v54 = vld [vmem:[%s3654_s1 + $0xb0] ss:$8 sps:$4 sm:$0xff]   ;;  %v41_v7 = vpack.c.bf16 %v34_v4, %v34_v4 }
  0x13   :  { %661 = vmatpush1.bf16.msra.mxu0 %v2439_v18  ;;  %v2491_v55 = vld [vmem:[%s3654_s1 + $0xa4] ss:$8 sps:$4 sm:$0xff]   ;;  %v2490_v56 = vld [vmem:[%s3654_s1 + $0x1b0] ss:$8 sps:$4 sm:$0xff]   ;;  %v2493_v58 = vld [vmem:[%s3654_s1 + $0xa0] ss:$8 sps:$4 sm:$0xff]  }
  0x14   :  { %662 = vmatprep.subr.bf16.mxu0 %v2443_v19  ;;  %702 = vmatpush1.bf16.msra.mxu1 %v2442_v20  ;;  %v2494_v57 = vld [vmem:[%s3654_s1 + $0x1a4] ss:$8 sps:$4 sm:$0xff]   ;;  %v2497_v59 = vld [vmem:[%s3654_s1 + $0x94] ss:$8 sps:$4 sm:$0xff]   ;;  %v2496_v60 = vld [vmem:[%s3654_s1 + $0x1a0] ss:$8 sps:$4 sm:$0xff]  }
  0x15   :  { %703 = vmatprep.subr.bf16.mxu1 %v2446_v21  ;;  %684 = vmatprep.mubr.bf16.mxu0 %v42_v48  ;;  %v2500_v61 = vld [vmem:[%s3654_s1 + $0x194] ss:$8 sps:$4 sm:$0xff]   ;;  %v2499_v62 = vld [vmem:[%s3654_s1 + $0x90] ss:$8 sps:$4 sm:$0xff]   ;;  %v2503_v63 = vld [vmem:[%s3654_s1 + $0x84] ss:$8 sps:$4 sm:$0xff]  }
  0x16   :  { %725 = vmatprep.mubr.bf16.mxu1 %v44_v52  ;;  %v2502_v0 = vld [vmem:[%s3654_s1 + $0x190] ss:$8 sps:$4 sm:$0xff]   ;;  %v2505_v1 = vld [vmem:[%s3654_s1 + $0x80] ss:$8 sps:$4 sm:$0xff]   ;;  %v2506_v2 = vld [vmem:[%s3654_s1 + $0x184] ss:$8 sps:$4 sm:$0xff]  }
  0x17   :  { %663 = vmatpush1.bf16.msra.mxu0 %v2445_v22  ;;  %v2508_v3 = vld [vmem:[%s3654_s1 + $0x180] ss:$8 sps:$4 sm:$0xff]   ;;  %v2511_v5 = vld [vmem:[%s3654_s1 + $0x274] ss:$8 sps:$4 sm:$0xff]   ;;  %v2509_v8 = vld [vmem:[%s3654_s1 + $0x270] ss:$8 sps:$4 sm:$0xff]  }
  0x18   :  { %664 = vmatprep.subr.bf16.mxu0 %v2449_v23  ;;  %704 = vmatpush1.bf16.msra.mxu1 %v2448_v24  ;;  %v36_v6 = vld [vmem:[%s3653_s0 + $0x10] sm:$0xff]  ;;  %v2514_v9 = vld [vmem:[%s3654_s1 + $0x264] ss:$8 sps:$4 sm:$0xff]   ;;  %v2554_v11 = vld [vmem:[%s3654_s1 + $0x300] ss:$8 sps:$4 sm:$0xff]   ;;  %v2810_v19 = vmov 0  }
  0x19   :  { %705 = vmatprep.subr.bf16.mxu1 %v2452_v25  ;;  %v43_v10 = vpack.c.bf16 %v36_v6, %v36_v6  ;;  %v2556_v12 = vld [vmem:[%s3654_s1 + $0x304] ss:$8 sps:$4 sm:$0xff]   ;;  %v2512_v13 = vld [vmem:[%s3654_s1 + $0x260] ss:$8 sps:$4 sm:$0xff]   ;;  %v2517_v14 = vld [vmem:[%s3654_s1 + $0x254] ss:$8 sps:$4 sm:$0xff]  }
  0x1a   :  { %v40_v15 = vld [vmem:[%s3653_s0 + $0x30] sm:$0xff]  ;;  %v39_v16 = vld [vmem:[%s3653_s0 + $0x28] sm:$0xff] }
  0x1b   :  { %665 = vmatpush1.bf16.msra.mxu0 %v2451_v26  ;;  %v46_v17 = vpack.c.bf16 %v39_v16, %v39_v16  ;;  %v2515_v18 = vld [vmem:[%s3654_s1 + $0x250] ss:$8 sps:$4 sm:$0xff]   ;;  %v2520_v20 = vld [vmem:[%s3654_s1 + $0x244] ss:$8 sps:$4 sm:$0xff]   ;;  %v47_v21 = vpack.c.bf16 %v40_v15, %v40_v15  ;;  %v2518_v22 = vld [vmem:[%s3654_s1 + $0x240] ss:$8 sps:$4 sm:$0xff]  }
  0x1c   :  { %666 = vmatprep.subr.bf16.mxu0 %v2455_v27  ;;  %706 = vmatpush1.bf16.msra.mxu1 %v2454_v28  ;;  %v2523_v23 = vld [vmem:[%s3654_s1 + $0x234] ss:$8 sps:$4 sm:$0xff]   ;;  %v2521_v24 = vld [vmem:[%s3654_s1 + $0x230] ss:$8 sps:$4 sm:$0xff]   ;;  %v2526_v25 = vld [vmem:[%s3654_s1 + $0x224] ss:$8 sps:$4 sm:$0xff]  }
  0x1d   :  { %707 = vmatprep.subr.bf16.mxu1 %v2458_v29  ;;  %v2524_v26 = vld [vmem:[%s3654_s1 + $0x220] ss:$8 sps:$4 sm:$0xff]   ;;  %v2529_v27 = vld [vmem:[%s3654_s1 + $0x214] ss:$8 sps:$4 sm:$0xff]   ;;  %v2527_v28 = vld [vmem:[%s3654_s1 + $0x210] ss:$8 sps:$4 sm:$0xff]  }
  0x1e   :  { %v2532_v29 = vld [vmem:[%s3654_s1 + $0x204] ss:$8 sps:$4 sm:$0xff]   ;;  %v2557_v46 = vld [vmem:[%s3654_s1 + $0x280] ss:$8 sps:$4 sm:$0xff]  }
  0x1f   :  { %667 = vmatpush1.bf16.msra.mxu0 %v2457_v30  ;;  %v2530_v30 = vld [vmem:[%s3654_s1 + $0x200] ss:$8 sps:$4 sm:$0xff]  }
  0x20   :  { %668 = vmatprep.subr.bf16.mxu0 %v2461_v31  ;;  %708 = vmatpush1.bf16.msra.mxu1 %v2460_v32  ;;  %v2535_v31 = vld [vmem:[%s3654_s1 + $0x2f4] ss:$8 sps:$4 sm:$0xff]   ;;  %v2533_v32 = vld [vmem:[%s3654_s1 + $0x2f0] ss:$8 sps:$4 sm:$0xff]  }
  0x21   :  { %709 = vmatprep.subr.bf16.mxu1 %v2464_v33  ;;  %v2538_v33 = vld [vmem:[%s3654_s1 + $0x2e4] ss:$8 sps:$4 sm:$0xff]  }
  0x23   :  { %669 = vmatpush2.bf16.msra.mxu0 %v2463_v34  ;;  %v2536_v34 = vld [vmem:[%s3654_s1 + $0x2e0] ss:$8 sps:$4 sm:$0xff]  }
  0x24   :  { %670 = vmatprep.subr.bf16.mxu0 %v2467_v35  ;;  %710 = vmatpush2.bf16.msra.mxu1 %v2466_v36  ;;  %v2541_v35 = vld [vmem:[%s3654_s1 + $0x2d4] ss:$8 sps:$4 sm:$0xff]   ;;  %v2539_v36 = vld [vmem:[%s3654_s1 + $0x2d0] ss:$8 sps:$4 sm:$0xff]  }
  0x25   :  { %711 = vmatprep.subr.bf16.mxu1 %v2470_v37  ;;  %v2544_v37 = vld [vmem:[%s3654_s1 + $0x2c4] ss:$8 sps:$4 sm:$0xff]  }
  0x27   :  { %671 = vmatpush2.bf16.msra.mxu0 %v2469_v38  ;;  %v2542_v38 = vld [vmem:[%s3654_s1 + $0x2c0] ss:$8 sps:$4 sm:$0xff]  }
  0x28   :  { %672 = vmatprep.subr.bf16.mxu0 %v2473_v39  ;;  %712 = vmatpush2.bf16.msra.mxu1 %v2472_v40  ;;  %v2547_v39 = vld [vmem:[%s3654_s1 + $0x2b4] ss:$8 sps:$4 sm:$0xff]   ;;  %v2545_v40 = vld [vmem:[%s3654_s1 + $0x2b0] ss:$8 sps:$4 sm:$0xff]  }
  0x29   :  { %713 = vmatprep.subr.bf16.mxu1 %v2476_v41  ;;  %v2550_v41 = vld [vmem:[%s3654_s1 + $0x2a4] ss:$8 sps:$4 sm:$0xff]  }
  0x2b   :  { %673 = vmatpush2.bf16.msra.mxu0 %v2475_v42  ;;  %v2548_v42 = vld [vmem:[%s3654_s1 + $0x2a0] ss:$8 sps:$4 sm:$0xff]  }
  0x2c   :  { %674 = vmatprep.subr.bf16.mxu0 %v2479_v43  ;;  %714 = vmatpush2.bf16.msra.mxu1 %v2478_v44  ;;  %v2553_v43 = vld [vmem:[%s3654_s1 + $0x294] ss:$8 sps:$4 sm:$0xff]   ;;  %v2551_v44 = vld [vmem:[%s3654_s1 + $0x290] ss:$8 sps:$4 sm:$0xff]  }
  0x2d   :  { %715 = vmatprep.subr.bf16.mxu1 %v2482_v45  ;;  %v2559_v45 = vld [vmem:[%s3654_s1 + $0x284] ss:$8 sps:$4 sm:$0xff]  }
  0x2f   :  { %675 = vmatpush2.bf16.msra.mxu0 %v2481_v47  ;;  %v38_v47 = vld [vmem:[%s3653_s0 + $0x20] sm:$0xff] }
  0x30   :  { %676 = vmatprep.subr.bf16.mxu0 %v2485_v49  ;;  %716 = vmatpush2.bf16.msra.mxu1 %v2484_v51  ;;  %v45_v48 = vpack.c.bf16 %v38_v47, %v38_v47 }
  0x31   :  { %717 = vmatprep.subr.bf16.mxu1 %v2488_v53 }
  0x33   :  { %677 = vmatpush2.bf16.msra.mxu0 %v2487_v54 }
  0x34   :  { %678 = vmatprep.subr.bf16.mxu0 %v2491_v55  ;;  %718 = vmatpush2.bf16.msra.mxu1 %v2490_v56 }
  0x35   :  { %719 = vmatprep.subr.bf16.mxu1 %v2494_v57 }
  0x37   :  { %679 = vmatpush2.bf16.msra.mxu0 %v2493_v58 }
  0x38   :  { %680 = vmatprep.subr.bf16.mxu0 %v2497_v59  ;;  %720 = vmatpush2.bf16.msra.mxu1 %v2496_v60 }
  0x39   :  { %721 = vmatprep.subr.bf16.mxu1 %v2500_v61 }
  0x3b   :  { %681 = vmatpush2.bf16.msra.mxu0 %v2499_v62 }
  0x3c   :  { %682 = vmatprep.subr.bf16.mxu0 %v2503_v63  ;;  %722 = vmatpush2.bf16.msra.mxu1 %v2502_v0 }
  0x3d   :  { %723 = vmatprep.subr.bf16.mxu1 %v2506_v2 }
  0x3f   :  { %683 = vmatpush2.bf16.msra.mxu0 %v2505_v1 }
  0x40   :  { %734 = vmatprep.subr.bf16.mxu0 %v2511_v5  ;;  %724 = vmatpush2.bf16.msra.mxu1 %v2508_v3 }
  0x41   :  { %789 = vmatprep.subr.bf16.mxu1 %v2556_v12 }
  0x42   :  { %685 = vmatmul.mubr.bf16.vlgmr.msra.gmra.mxu0 %v41_v7 }
  0x43   :  { %735 = vmatpush1.bf16.msra.mxu0 %v2509_v8  ;;  %726 = vmatmul.mubr.bf16.vlgmr.msra.gmra.mxu1 %v43_v10 }
  0x44   :  { %736 = vmatprep.subr.bf16.mxu0 %v2514_v9  ;;  %790 = vmatpush1.bf16.msra.mxu1 %v2554_v11 }
  0x45   :  { %807 = vmatprep.mubr.bf16.mxu1 %v2810_v19  ;;  %766 = vmatprep.mubr.bf16.mxu0 %v46_v17 }
  0x47   :  { %737 = vmatpush1.bf16.msra.mxu0 %v2512_v13 }
  0x48   :  { %738 = vmatprep.subr.bf16.mxu0 %v2517_v14 }
  0x4b   :  { %739 = vmatpush1.bf16.msra.mxu0 %v2515_v18  ;;  %2214 = vmatmul.mubr.msk.bf16.vlgmr.msra.gmra.mxu1 %vm648_vm0, %v47_v21 }
  0x4c   :  { %740 = vmatprep.subr.bf16.mxu0 %v2520_v20 }
  0x4f   :  { %741 = vmatpush1.bf16.msra.mxu0 %v2518_v22 }
  0x50   :  { %742 = vmatprep.subr.bf16.mxu0 %v2523_v23 }
  0x53   :  { %743 = vmatpush1.bf16.msra.mxu0 %v2521_v24 }
  0x54   :  { %744 = vmatprep.subr.bf16.mxu0 %v2526_v25 }
  0x57   :  { %745 = vmatpush1.bf16.msra.mxu0 %v2524_v26 }
  0x58   :  { %746 = vmatprep.subr.bf16.mxu0 %v2529_v27 }
  0x5b   :  { %747 = vmatpush1.bf16.msra.mxu0 %v2527_v28 }
  0x5c   :  { %748 = vmatprep.subr.bf16.mxu0 %v2532_v29 }
  0x5f   :  { %749 = vmatpush1.bf16.msra.mxu0 %v2530_v30 }
  0x60   :  { %750 = vmatprep.subr.bf16.mxu0 %v2535_v31 }
  0x63   :  { %751 = vmatpush2.bf16.msra.mxu0 %v2533_v32 }
  0x64   :  { %752 = vmatprep.subr.bf16.mxu0 %v2538_v33 }
  0x67   :  { %753 = vmatpush2.bf16.msra.mxu0 %v2536_v34 }
  0x68   :  { %754 = vmatprep.subr.bf16.mxu0 %v2541_v35 }
  0x6b   :  { %755 = vmatpush2.bf16.msra.mxu0 %v2539_v36 }
  0x6c   :  { %756 = vmatprep.subr.bf16.mxu0 %v2544_v37 }
  0x6f   :  { %757 = vmatpush2.bf16.msra.mxu0 %v2542_v38 }
  0x70   :  { %758 = vmatprep.subr.bf16.mxu0 %v2547_v39 }
  0x73   :  { %759 = vmatpush2.bf16.msra.mxu0 %v2545_v40 }
  0x74   :  { %760 = vmatprep.subr.bf16.mxu0 %v2550_v41 }
  0x77   :  { %761 = vmatpush2.bf16.msra.mxu0 %v2548_v42 }
  0x78   :  { %762 = vmatprep.subr.bf16.mxu0 %v2553_v43 }
  0x7b   :  { %763 = vmatpush2.bf16.msra.mxu0 %v2551_v44 }
  0x7c   :  { %764 = vmatprep.subr.bf16.mxu0 %v2559_v45 }
  0x7d   :  { %14 = vsyncpa [#allocation3], 0  ;;  %v2560_v49 = vld [vmem:[%s3656_s3 + $0x78] sm:$0xff]   ;;  %v2562_v51 = vld [vmem:[%s3656_s3 + $0x70] sm:$0xff]   ;;  %v148_v14 = vlaneseq }
  0x7e   :  { %v2561_v50 = vld [vmem:[%s3656_s3 + $0x38] sm:$0xff]   ;;  %2367 = vmatprep.subr.bf16.mxu1 %v2560_v49  ;;  %v2563_v52 = vld [vmem:[%s3656_s3 + $0x30] sm:$0xff]   ;;  %v2564_v53 = vld [vmem:[%s3656_s3 + $0x68] sm:$0xff]  }
  0x7f   :  { %765 = vmatpush2.bf16.msra.mxu0 %v2557_v46  ;;  %2368 = vmatpush3.bf16.msra.mxu1 %v2561_v50  ;;  %v2565_v54 = vld [vmem:[%s3656_s3 + $0x28] sm:$0xff]   ;;  %v2566_v55 = vld [vmem:[%s3656_s3 + $0x60] sm:$0xff]   ;;  %v2568_v57 = vld [vmem:[%s3656_s3 + $0x58] sm:$0xff]   ;;  %v3230_v15 = vshrl.u32 %v148_v14, 7 }
  0x80   :  { %2369 = vmatprep.subr.bf16.mxu1 %v2562_v51  ;;  %v2567_v56 = vld [vmem:[%s3656_s3 + $0x20] sm:$0xff]   ;;  %v2569_v58 = vld [vmem:[%s3656_s3 + $0x18] sm:$0xff]   ;;  %v2570_v59 = vld [vmem:[%s3656_s3 + $0x50] sm:$0xff]  }
  0x81   :  { %v2571_v60 = vld [vmem:[%s3656_s3 + $0x10] sm:$0xff]   ;;  %v2572_v61 = vld [vmem:[%s3656_s3 + $0x48] sm:$0xff]   ;;  %v2574_v63 = vld [vmem:[%s3656_s3 + $0x40] sm:$0xff]   ;;  %v3233_v16 = vsub.s32 0, %v3230_v15  ;;  %v3239_v18 = vsub.s32 1, %v3230_v15 }
  0x82   :  { %767 = vmatmul.mubr.bf16.vlgmr.msra.gmra.mxu0 %v45_v48  ;;  %v2573_v62 = vld [vmem:[%s3656_s3 + $0x8] sm:$0xff]   ;;  %v2575_v0 = vld [vmem:[%s3656_s3] sm:$0xff]   ;;  %v2578_v1 = vld [vmem:[%s3658_s5 + $0x74] ss:$8 sps:$4 sm:$0xff]  }
  0x83   :  { %2370 = vmatpush3.bf16.msra.mxu1 %v2563_v52  ;;  %v146_v17 = vld [vmem:[%s3655_s2] sm:$0x3]  ;;  %v2576_v37 = vld [vmem:[%s3658_s5 + $0x70] ss:$8 sps:$4 sm:$0xff]   ;;  %v2581_v39 = vld [vmem:[%s3658_s5 + $0x64] ss:$8 sps:$4 sm:$0xff]  }
  0x84   :  { %2371 = vmatprep.subr.bf16.mxu1 %v2564_v53  ;;  %v151_v20 = vrot.slane %v146_v17, %v3233_v16  ;;  %v155_v21 = vrot.slane %v146_v17, %v3239_v18  ;;  %v2579_v40 = vld [vmem:[%s3658_s5 + $0x60] ss:$8 sps:$4 sm:$0xff]   ;;  %v2584_v41 = vld [vmem:[%s3658_s5 + $0x54] ss:$8 sps:$4 sm:$0xff]   ;;  %v2582_v42 = vld [vmem:[%s3658_s5 + $0x50] ss:$8 sps:$4 sm:$0xff]  }
  0x85   :  { %v2587_v43 = vld [vmem:[%s3658_s5 + $0x44] ss:$8 sps:$4 sm:$0xff]   ;;  %v2590_v44 = vld [vmem:[%s3658_s5 + $0x34] ss:$8 sps:$4 sm:$0xff]   ;;  %v2588_v45 = vld [vmem:[%s3658_s5 + $0x30] ss:$8 sps:$4 sm:$0xff]  }
  0x86   :  { %v2593_v46 = vld [vmem:[%s3658_s5 + $0x24] ss:$8 sps:$4 sm:$0xff]   ;;  %v2591_v47 = vld [vmem:[%s3658_s5 + $0x20] ss:$8 sps:$4 sm:$0xff]   ;;  %v2596_v48 = vld [vmem:[%s3658_s5 + $0x14] ss:$8 sps:$4 sm:$0xff]  }
  0x87   :  { %2372 = vmatpush3.bf16.msra.mxu1 %v2565_v54  ;;  %v2594_v49 = vld [vmem:[%s3658_s5 + $0x10] ss:$8 sps:$4 sm:$0xff]   ;;  %v2599_v50 = vld [vmem:[%s3658_s5 + $0x4] ss:$8 sps:$4 sm:$0xff]   ;;  %v2597_v51 = vld [vmem:[%s3658_s5] ss:$8 sps:$4 sm:$0xff]  }
  0x88   :  { %2373 = vmatprep.subr.bf16.mxu1 %v2566_v55  ;;  %v2600_v52 = vld [vmem:[%s3660_s7 + $0x188] ss:$28 sps:$4 sm:$0xff]   ;;  %v2605_v54 = vld [vmem:[%s3660_s7 + $0x194] ss:$28 sps:$4 sm:$0xff]  }
  0x89   :  { %v2602_v53 = vld [vmem:[%s3660_s7 + $0x18c] ss:$28 sps:$4 sm:$0xff]   ;;  %v2608_v55 = vld [vmem:[%s3660_s7 + $0x154] ss:$28 sps:$4 sm:$0xff]  }
  0x8a   :  { %1890 = vmatprep.subr.bf16.mxu0 %v2602_v53  ;;  %v2672_v14 = vld [vmem:[%s3660_s7 + $0x268] ss:$28 sps:$4 sm:$0xff]   ;;  %v2680_v17 = vld [vmem:[%s3660_s7 + $0x234] ss:$28 sps:$4 sm:$0xff]   ;;  %v2683_v53 = vld [vmem:[%s3660_s7 + $0x23c] ss:$28 sps:$4 sm:$0xff]  }
  0x8b   :  { %2374 = vmatpush3.bf16.msra.mxu1 %v2567_v56  ;;  %1891 = vmatpush1.bf16.msra.mxu0 %v2600_v52  ;;  %v2606_v56 = vld [vmem:[%s3660_s7 + $0x150] ss:$28 sps:$4 sm:$0xff]  }
  0x8c   :  { %2375 = vmatprep.subr.bf16.mxu1 %v2568_v57  ;;  %1892 = vmatprep.subr.bf16.mxu0 %v2608_v55  ;;  %v2614_v57 = vld [vmem:[%s3660_s7 + $0x11c] ss:$28 sps:$4 sm:$0xff]   ;;  %v2675_v52 = vld [vmem:[%s3660_s7 + $0x270] ss:$28 sps:$4 sm:$0xff]  }
  0x8d   :  { %v2686_v55 = vld [vmem:[%s3660_s7 + $0x1fc] ss:$28 sps:$4 sm:$0xff]  }
  0x8f   :  { %2376 = vmatpush3.bf16.msra.mxu1 %v2569_v58  ;;  %1893 = vmatpush1.bf16.msra.mxu0 %v2606_v56  ;;  %v2612_v58 = vld [vmem:[%s3660_s7 + $0x118] ss:$28 sps:$4 sm:$0xff]   ;;  %v2689_v56 = vld [vmem:[%s3660_s7 + $0x204] ss:$28 sps:$4 sm:$0xff]  }
  0x90   :  { %2377 = vmatprep.subr.bf16.mxu1 %v2570_v59  ;;  %1894 = vmatprep.subr.bf16.mxu0 %v2614_v57  ;;  %v2620_v59 = vld [vmem:[%s3660_s7 + $0xe4] ss:$28 sps:$4 sm:$0xff]   ;;  %v2684_v57 = vld [vmem:[%s3660_s7 + $0x1f8] ss:$28 sps:$4 sm:$0xff]  }
  0x93   :  { %2378 = vmatpush3.bf16.msra.mxu1 %v2571_v60  ;;  %1895 = vmatpush1.bf16.msra.mxu0 %v2612_v58  ;;  %v2618_v60 = vld [vmem:[%s3660_s7 + $0xe0] ss:$28 sps:$4 sm:$0xff]  }
  0x94   :  { %2379 = vmatprep.subr.bf16.mxu1 %v2572_v61  ;;  %1896 = vmatprep.subr.bf16.mxu0 %v2620_v59  ;;  %v2626_v61 = vld [vmem:[%s3660_s7 + $0xac] ss:$28 sps:$4 sm:$0xff]   ;;  %v2687_v58 = vld [vmem:[%s3660_s7 + $0x200] ss:$28 sps:$4 sm:$0xff]  }
  0x95   :  { %v2692_v59 = vld [vmem:[%s3660_s7 + $0x1c4] ss:$28 sps:$4 sm:$0xff]  }
  0x97   :  { %2380 = vmatpush3.bf16.msra.mxu1 %v2573_v62  ;;  %1897 = vmatpush1.bf16.msra.mxu0 %v2618_v60  ;;  %v2624_v62 = vld [vmem:[%s3660_s7 + $0xa8] ss:$28 sps:$4 sm:$0xff]  }
  0x98   :  { %2381 = vmatprep.subr.bf16.mxu1 %v2574_v63  ;;  %1898 = vmatprep.subr.bf16.mxu0 %v2626_v61  ;;  %v2632_v63 = vld [vmem:[%s3660_s7 + $0x74] ss:$28 sps:$4 sm:$0xff]   ;;  %v2695_v60 = vld [vmem:[%s3660_s7 + $0x1cc] ss:$28 sps:$4 sm:$0xff]   ;;  %v2690_v61 = vld [vmem:[%s3660_s7 + $0x1c0] ss:$28 sps:$4 sm:$0xff]  }
  0x9b   :  { %2382 = vmatpush3.bf16.msra.mxu1 %v2575_v0  ;;  %1899 = vmatpush1.bf16.msra.mxu0 %v2624_v62  ;;  %v2630_v0 = vld [vmem:[%s3660_s7 + $0x70] ss:$28 sps:$4 sm:$0xff]   ;;  %v2693_v62 = vld [vmem:[%s3660_s7 + $0x1c8] ss:$28 sps:$4 sm:$0xff]  }
  0x9c   :  { %1104 = vmatprep.subr.bf16.mxu1 %v2578_v1  ;;  %1900 = vmatprep.subr.bf16.mxu0 %v2632_v63  ;;  %v2638_v1 = vld [vmem:[%s3660_s7 + $0x3c] ss:$28 sps:$4 sm:$0xff]  }
  0x9d   :  { %v2698_v63 = vld [vmem:[%s3660_s7 + $0x19c] ss:$28 sps:$4 sm:$0xff]  }
  0x9f   :  { %1901 = vmatpush1.bf16.msra.mxu0 %v2630_v0  ;;  %v2699_v0 = vld [vmem:[%s3660_s7 + $0x360] ss:$28 sps:$4 sm:$0xff]  }
  0xa0   :  { %1902 = vmatprep.subr.bf16.mxu0 %v2638_v1  ;;  %v1012_v1 = vld [vmem:[%s3659_s6] sm:$0x3] }
 0x102   :  { %v686_v2 = vpop.f32.mrf.mxu0 }
 0x103   :  { %v727_v4 = vpop.f32.mrf.mxu1  ;;  %v687_v22 = vadd.f32 %v686_v2, %v151_v20  ;;  %v2636_v2 = vld [vmem:[%s3660_s7 + $0x38] ss:$28 sps:$4 sm:$0xff]   ;;  %v2678_v20 = vld [vmem:[%s3660_s7 + $0x230] ss:$28 sps:$4 sm:$0xff]  }
 0x104   :  { %v688_v3 = vpop.f32.mrf.mxu0  ;;  %1903 = vmatpush1.bf16.msra.mxu0 %v2636_v2  ;;  %v1017_v2 = vrot.slane %v1012_v1, %v3233_v16 }
 0x105   :  { %v729_v6 = vpop.f32.mrf.mxu1  ;;  %v689_v23 = vadd.f32 %v688_v3, %v155_v21  ;;  %v728_v24 = vadd.f32 %v727_v4, %v687_v22  ;;  %v2644_v3 = vld [vmem:[%s3660_s7 + $0x4] ss:$28 sps:$4 sm:$0xff]  }
 0x106   :  { %v690_v5 = vpop.f32.mrf.mxu0  ;;  %v2642_v4 = vld [vmem:[%s3660_s7] ss:$28 sps:$4 sm:$0xff]   ;;  %1904 = vmatprep.subr.bf16.mxu0 %v2644_v3  ;;  %v1021_v3 = vrot.slane %v1012_v1, %v3239_v18  ;;  %v1293_v1 = vsub.s32 3, %v3230_v15 }
 0x107   :  { %v731_v8 = vpop.f32.mrf.mxu1  ;;  %v730_v26 = vadd.f32 %v729_v6, %v689_v23  ;;  %v2650_v5 = vld [vmem:[%s3660_s7 + $0x34c] ss:$28 sps:$4 sm:$0xff]   ;;  %v2215_v22 = vld [vmem:[%s3657_s4] ss:$0 sm:$0xff] }
 0x108   :  { %v691_v7 = vpop.f32.mrf.mxu0  ;;  %1905 = vmatpush1.bf16.msra.mxu0 %v2642_v4  ;;  %v2648_v6 = vld [vmem:[%s3660_s7 + $0x348] ss:$28 sps:$4 sm:$0xff]   ;;  %v2654_v8 = vld [vmem:[%s3660_s7 + $0x310] ss:$28 sps:$4 sm:$0xff]  }
 0x109   :  { %v732_v9 = vpop.f32.mrf.mxu1  ;;  %1906 = vmatprep.subr.bf16.mxu0 %v2650_v5  ;;  %v2656_v7 = vld [vmem:[%s3660_s7 + $0x314] ss:$28 sps:$4 sm:$0xff]  }
 0x10a   :  { %v2662_v9 = vld [vmem:[%s3660_s7 + $0x2dc] ss:$28 sps:$4 sm:$0xff]  }
 0x10b   :  { %v809_v10 = vpop.f32.mrf.mxu1 }
 0x10c   :  { %1907 = vmatpush2.bf16.msra.mxu0 %v2648_v6 }
 0x10d   :  { %v811_v11 = vpop.f32.mrf.mxu1  ;;  %1908 = vmatprep.subr.bf16.mxu0 %v2656_v7 }
 0x10f   :  { %v813_v12 = vpop.f32.mrf.mxu1 }
 0x110   :  { %1909 = vmatpush2.bf16.msra.mxu0 %v2654_v8  ;;  %v2666_v12 = vld [vmem:[%s3660_s7 + $0x2a0] ss:$28 sps:$4 sm:$0xff]  }
 0x111   :  { %v814_v13 = vpop.f32.mrf.mxu1  ;;  %1910 = vmatprep.subr.bf16.mxu0 %v2662_v9 }
 0x112   :  { %v2674_v13 = vld [vmem:[%s3660_s7 + $0x26c] ss:$28 sps:$4 sm:$0xff]  }
 0x142   :  { %v768_v25 = vpop.f32.mrf.mxu0 }
 0x143   :  { %v769_v27 = vadd.f32 %v768_v25, %v728_v24 }
 0x144   :  { %v770_v28 = vpop.f32.mrf.mxu0 }
 0x145   :  { %v810_v29 = vadd.f32 %v809_v10, %v769_v27  ;;  %v771_v30 = vadd.f32 %v770_v28, %v730_v26  ;;  %v2660_v10 = vld [vmem:[%s3660_s7 + $0x2d8] ss:$28 sps:$4 sm:$0xff]   ;;  %v2603_v28 = vld [vmem:[%s3660_s7 + $0x190] ss:$28 sps:$4 sm:$0xff]  }
 0x146   :  { %v772_v31 = vpop.f32.mrf.mxu0  ;;  %1911 = vmatpush2.bf16.msra.mxu0 %v2660_v10 }
 0x147   :  { %v812_v32 = vadd.f32 %v811_v11, %v771_v30  ;;  %v816_v33 = vmax.f32 %v810_v29, 0.0  ;;  %v2668_v11 = vld [vmem:[%s3660_s7 + $0x2a4] ss:$28 sps:$4 sm:$0xff]   ;;  %v2611_v30 = vld [vmem:[%s3660_s7 + $0x15c] ss:$28 sps:$4 sm:$0xff]  }
 0x148   :  { %v773_v34 = vpop.f32.mrf.mxu0  ;;  %1912 = vmatprep.subr.bf16.mxu0 %v2668_v11  ;;  %v2609_v31 = vld [vmem:[%s3660_s7 + $0x158] ss:$28 sps:$4 sm:$0xff]  }
 0x149   :  { %v817_v35 = vmax.f32 %v812_v32, 0.0  ;;  %v818_v38 = vpack.c.bf16 %v816_v33, %v816_v33  ;;  %v2617_v32 = vld [vmem:[%s3660_s7 + $0x124] ss:$28 sps:$4 sm:$0xff]   ;;  %v2623_v34 = vld [vmem:[%s3660_s7 + $0xec] ss:$28 sps:$4 sm:$0xff]  }
 0x14a   :  { %1913 = vmatpush2.bf16.msra.mxu0 %v2666_v12  ;;  %v2615_v33 = vld [vmem:[%s3660_s7 + $0x120] ss:$28 sps:$4 sm:$0xff]  }
 0x14b   :  { %v819_v36 = vpack.c.bf16 %v817_v35, %v817_v35  ;;  %1914 = vmatprep.subr.bf16.mxu0 %v2674_v13  ;;  %v2621_v35 = vld [vmem:[%s3660_s7 + $0xe8] ss:$28 sps:$4 sm:$0xff]   ;;  %v2696_v13 = vld [vmem:[%s3660_s7 + $0x198] ss:$28 sps:$4 sm:$0xff]  }
 0x14d   :  { %987 = vmatprep.mubr.bf16.mxu1 %v819_v36  ;;  %v2629_v36 = vld [vmem:[%s3660_s7 + $0xb4] ss:$28 sps:$4 sm:$0xff]  }
 0x14e   :  { %988 = vmatmul.mubr.bf16.vlgmr.msra.gmra.mxu1 %v818_v38  ;;  %1915 = vmatpush2.bf16.msra.mxu0 %v2672_v14  ;;  %v2635_v38 = vld [vmem:[%s3660_s7 + $0x7c] ss:$28 sps:$4 sm:$0xff]  }
 0x14f   :  { %1105 = vmatpush1.bf16.msra.mxu1 %v2576_v37  ;;  %1136 = vmatprep.mubr.bf16.mxu1 %v2810_v19  ;;  %v2585_v19 = vld [vmem:[%s3658_s5 + $0x40] ss:$8 sps:$4 sm:$0xff]   ;;  %v2627_v37 = vld [vmem:[%s3660_s7 + $0xb0] ss:$28 sps:$4 sm:$0xff]  }
 0x150   :  { %1106 = vmatprep.subr.bf16.mxu1 %v2581_v39  ;;  %1916 = vmatprep.subr.bf16.mxu0 %v2680_v17  ;;  %v2633_v39 = vld [vmem:[%s3660_s7 + $0x78] ss:$28 sps:$4 sm:$0xff]   ;;  %v2700_v14 = vld [vmem:[%s3660_s7 + $0x1a0] ss:$28 sps:$4 sm:$0xff]  }
 0x152   :  { %1917 = vmatpush2.bf16.msra.mxu0 %v2678_v20  ;;  %v2703_v20 = vld [vmem:[%s3660_s7 + $0x164] ss:$28 sps:$4 sm:$0xff]  }
 0x153   :  { %1107 = vmatpush1.bf16.msra.mxu1 %v2579_v40  ;;  %v2641_v40 = vld [vmem:[%s3660_s7 + $0x44] ss:$28 sps:$4 sm:$0xff]   ;;  %1918 = vmatprep.subr.bf16.mxu0 %v2686_v55  ;;  %v2750_v55 = vld [vmem:[%s3660_s7 + $0x27c] ss:$28 sps:$4 sm:$0xff]  }
 0x154   :  { %1108 = vmatprep.subr.bf16.mxu1 %v2584_v41  ;;  %v2639_v41 = vld [vmem:[%s3660_s7 + $0x40] ss:$28 sps:$4 sm:$0xff]  }
 0x156   :  { %1919 = vmatpush2.bf16.msra.mxu0 %v2684_v57  ;;  %v2753_v57 = vld [vmem:[%s3660_s7 + $0x244] ss:$28 sps:$4 sm:$0xff]  }
 0x157   :  { %1109 = vmatpush1.bf16.msra.mxu1 %v2582_v42  ;;  %v2647_v42 = vld [vmem:[%s3660_s7 + $0xc] ss:$28 sps:$4 sm:$0xff]   ;;  %1920 = vmatprep.subr.bf16.mxu0 %v2692_v59 }
 0x158   :  { %1110 = vmatprep.subr.bf16.mxu1 %v2587_v43  ;;  %v2645_v43 = vld [vmem:[%s3660_s7 + $0x8] ss:$28 sps:$4 sm:$0xff]  }
 0x159   :  { %v2756_v59 = vld [vmem:[%s3660_s7 + $0x20c] ss:$28 sps:$4 sm:$0xff]  }
 0x15a   :  { %1921 = vmatpush2.bf16.msra.mxu0 %v2690_v61  ;;  %v2759_v61 = vld [vmem:[%s3660_s7 + $0x1d4] ss:$28 sps:$4 sm:$0xff]  }
 0x15b   :  { %1111 = vmatpush1.bf16.msra.mxu1 %v2585_v19  ;;  %v2653_v19 = vld [vmem:[%s3660_s7 + $0x354] ss:$28 sps:$4 sm:$0xff]   ;;  %1972 = vmatprep.subr.bf16.mxu0 %v2698_v63  ;;  %v1289_v63 = vsub.s32 2, %v3230_v15 }
 0x15c   :  { %1112 = vmatprep.subr.bf16.mxu1 %v2590_v44  ;;  %v2651_v44 = vld [vmem:[%s3660_s7 + $0x350] ss:$28 sps:$4 sm:$0xff]  }
 0x15f   :  { %1113 = vmatpush1.bf16.msra.mxu1 %v2588_v45  ;;  %v2659_v45 = vld [vmem:[%s3660_s7 + $0x31c] ss:$28 sps:$4 sm:$0xff]  }
 0x160   :  { %1114 = vmatprep.subr.bf16.mxu1 %v2593_v46  ;;  %v2657_v46 = vld [vmem:[%s3660_s7 + $0x318] ss:$28 sps:$4 sm:$0xff]  }
 0x163   :  { %1115 = vmatpush1.bf16.msra.mxu1 %v2591_v47  ;;  %v2665_v47 = vld [vmem:[%s3660_s7 + $0x2e4] ss:$28 sps:$4 sm:$0xff]  }
 0x164   :  { %1116 = vmatprep.subr.bf16.mxu1 %v2596_v48  ;;  %v2663_v48 = vld [vmem:[%s3660_s7 + $0x2e0] ss:$28 sps:$4 sm:$0xff]  }
 0x167   :  { %1117 = vmatpush1.bf16.msra.mxu1 %v2594_v49  ;;  %v2671_v49 = vld [vmem:[%s3660_s7 + $0x2ac] ss:$28 sps:$4 sm:$0xff]  }
 0x168   :  { %1118 = vmatprep.subr.bf16.mxu1 %v2599_v50  ;;  %v2669_v50 = vld [vmem:[%s3660_s7 + $0x2a8] ss:$28 sps:$4 sm:$0xff]  }
 0x16b   :  { %1119 = vmatpush1.bf16.msra.mxu1 %v2597_v51  ;;  %v2677_v51 = vld [vmem:[%s3660_s7 + $0x274] ss:$28 sps:$4 sm:$0xff]  }
 0x16c   :  { %1931 = vmatprep.subr.bf16.mxu1 %v2605_v54  ;;  %v2681_v54 = vld [vmem:[%s3660_s7 + $0x238] ss:$28 sps:$4 sm:$0xff]  }
 0x20e   :  { %v2383_v21 = vpop.f32.mrf.mxu1 }
 0x210   :  { %v2384_v23 = vpop.f32.mrf.mxu1 }
 0x211   :  { %v2385_v24 = vadd.f32 %v2384_v23, %v2383_v21  ;;  %v2704_v21 = vld [vmem:[%s3660_s7 + $0x328] ss:$28 sps:$4 sm:$0xff]  }
 0x212   :  { %v2386_v25 = vpop.f32.mrf.mxu1  ;;  %v2705_v23 = vld [vmem:[%s3660_s7 + $0x168] ss:$28 sps:$4 sm:$0xff]  }
 0x213   :  { %v990_v26 = vadd.f32 %v2385_v24, %v2215_v22  ;;  %v2701_v22 = vld [vmem:[%s3660_s7 + $0x160] ss:$28 sps:$4 sm:$0xff]   ;;  %v2708_v24 = vld [vmem:[%s3660_s7 + $0x12c] ss:$28 sps:$4 sm:$0xff]  }
 0x214   :  { %v2387_v27 = vpop.f32.mrf.mxu1  ;;  %v2709_v25 = vld [vmem:[%s3660_s7 + $0x2f0] ss:$28 sps:$4 sm:$0xff]  }
 0x215   :  { %v995_v29 = vpack.c.bf16 %v990_v26, %v990_v26  ;;  %v2706_v26 = vld [vmem:[%s3660_s7 + $0x128] ss:$28 sps:$4 sm:$0xff]   ;;  %v2710_v27 = vld [vmem:[%s3660_s7 + $0x130] ss:$28 sps:$4 sm:$0xff]  }
 0x217   :  { %1137 = vmatmul.mubr.bf16.vlgmr.msra.gmra.mxu1 %v995_v29  ;;  %v2714_v29 = vld [vmem:[%s3660_s7 + $0x2b8] ss:$28 sps:$4 sm:$0xff]  }
 0x218   :  { %1932 = vmatpush1.bf16.msra.mxu1 %v2603_v28  ;;  %v2713_v28 = vld [vmem:[%s3660_s7 + $0xf4] ss:$28 sps:$4 sm:$0xff]  }
 0x219   :  { %1933 = vmatprep.subr.bf16.mxu1 %v2611_v30  ;;  %v2711_v30 = vld [vmem:[%s3660_s7 + $0xf0] ss:$28 sps:$4 sm:$0xff]  }
 0x21c   :  { %1934 = vmatpush1.bf16.msra.mxu1 %v2609_v31  ;;  %v2715_v31 = vld [vmem:[%s3660_s7 + $0xf8] ss:$28 sps:$4 sm:$0xff]  }
 0x21d   :  { %1935 = vmatprep.subr.bf16.mxu1 %v2617_v32  ;;  %v2718_v32 = vld [vmem:[%s3660_s7 + $0xbc] ss:$28 sps:$4 sm:$0xff]  }
 0x220   :  { %1936 = vmatpush1.bf16.msra.mxu1 %v2615_v33  ;;  %v2719_v33 = vld [vmem:[%s3660_s7 + $0x280] ss:$28 sps:$4 sm:$0xff]  }
 0x221   :  { %1937 = vmatprep.subr.bf16.mxu1 %v2623_v34  ;;  %v2716_v34 = vld [vmem:[%s3660_s7 + $0xb8] ss:$28 sps:$4 sm:$0xff]  }
 0x224   :  { %1938 = vmatpush1.bf16.msra.mxu1 %v2621_v35  ;;  %v2720_v35 = vld [vmem:[%s3660_s7 + $0xc0] ss:$28 sps:$4 sm:$0xff]  }
 0x225   :  { %1939 = vmatprep.subr.bf16.mxu1 %v2629_v36  ;;  %v2723_v36 = vld [vmem:[%s3660_s7 + $0x84] ss:$28 sps:$4 sm:$0xff]  }
 0x228   :  { %1940 = vmatpush1.bf16.msra.mxu1 %v2627_v37  ;;  %v2724_v37 = vld [vmem:[%s3660_s7 + $0x248] ss:$28 sps:$4 sm:$0xff]  }
 0x229   :  { %1941 = vmatprep.subr.bf16.mxu1 %v2635_v38  ;;  %v2721_v38 = vld [vmem:[%s3660_s7 + $0x80] ss:$28 sps:$4 sm:$0xff]  }
 0x22c   :  { %1942 = vmatpush1.bf16.msra.mxu1 %v2633_v39  ;;  %v2725_v39 = vld [vmem:[%s3660_s7 + $0x88] ss:$28 sps:$4 sm:$0xff]  }
 0x22d   :  { %1943 = vmatprep.subr.bf16.mxu1 %v2641_v40  ;;  %v2728_v40 = vld [vmem:[%s3660_s7 + $0x4c] ss:$28 sps:$4 sm:$0xff]  }
 0x230   :  { %1944 = vmatpush1.bf16.msra.mxu1 %v2639_v41  ;;  %v2729_v41 = vld [vmem:[%s3660_s7 + $0x210] ss:$28 sps:$4 sm:$0xff]  }
 0x231   :  { %1945 = vmatprep.subr.bf16.mxu1 %v2647_v42  ;;  %v2726_v42 = vld [vmem:[%s3660_s7 + $0x48] ss:$28 sps:$4 sm:$0xff]  }
 0x234   :  { %1946 = vmatpush1.bf16.msra.mxu1 %v2645_v43  ;;  %v2730_v43 = vld [vmem:[%s3660_s7 + $0x50] ss:$28 sps:$4 sm:$0xff]  }
 0x235   :  { %1947 = vmatprep.subr.bf16.mxu1 %v2653_v19  ;;  %v2733_v19 = vld [vmem:[%s3660_s7 + $0x14] ss:$28 sps:$4 sm:$0xff]  }
 0x238   :  { %1948 = vmatpush2.bf16.msra.mxu1 %v2651_v44  ;;  %v2734_v44 = vld [vmem:[%s3660_s7 + $0x1d8] ss:$28 sps:$4 sm:$0xff]  }
 0x239   :  { %1949 = vmatprep.subr.bf16.mxu1 %v2659_v45  ;;  %v2731_v45 = vld [vmem:[%s3660_s7 + $0x10] ss:$28 sps:$4 sm:$0xff]  }
 0x23c   :  { %1950 = vmatpush2.bf16.msra.mxu1 %v2657_v46  ;;  %v2735_v46 = vld [vmem:[%s3660_s7 + $0x18] ss:$28 sps:$4 sm:$0xff]  }
 0x23d   :  { %1951 = vmatprep.subr.bf16.mxu1 %v2665_v47  ;;  %v2738_v47 = vld [vmem:[%s3660_s7 + $0x35c] ss:$28 sps:$4 sm:$0xff]  }
 0x240   :  { %1952 = vmatpush2.bf16.msra.mxu1 %v2663_v48  ;;  %v2736_v48 = vld [vmem:[%s3660_s7 + $0x358] ss:$28 sps:$4 sm:$0xff]  }
 0x241   :  { %1953 = vmatprep.subr.bf16.mxu1 %v2671_v49  ;;  %v2741_v49 = vld [vmem:[%s3660_s7 + $0x324] ss:$28 sps:$4 sm:$0xff]  }
 0x244   :  { %1954 = vmatpush2.bf16.msra.mxu1 %v2669_v50  ;;  %v2739_v50 = vld [vmem:[%s3660_s7 + $0x320] ss:$28 sps:$4 sm:$0xff]  }
 0x245   :  { %1955 = vmatprep.subr.bf16.mxu1 %v2677_v51  ;;  %v2744_v51 = vld [vmem:[%s3660_s7 + $0x2ec] ss:$28 sps:$4 sm:$0xff]  }
 0x248   :  { %1956 = vmatpush2.bf16.msra.mxu1 %v2675_v52  ;;  %v2742_v52 = vld [vmem:[%s3660_s7 + $0x2e8] ss:$28 sps:$4 sm:$0xff]  }
 0x249   :  { %1957 = vmatprep.subr.bf16.mxu1 %v2683_v53  ;;  %v2747_v53 = vld [vmem:[%s3660_s7 + $0x2b4] ss:$28 sps:$4 sm:$0xff]  }
 0x24c   :  { %1958 = vmatpush2.bf16.msra.mxu1 %v2681_v54  ;;  %v2745_v54 = vld [vmem:[%s3660_s7 + $0x2b0] ss:$28 sps:$4 sm:$0xff]  }
 0x24d   :  { %1959 = vmatprep.subr.bf16.mxu1 %v2689_v56  ;;  %v2748_v56 = vld [vmem:[%s3660_s7 + $0x278] ss:$28 sps:$4 sm:$0xff]  }
 0x250   :  { %1960 = vmatpush2.bf16.msra.mxu1 %v2687_v58  ;;  %v2751_v58 = vld [vmem:[%s3660_s7 + $0x240] ss:$28 sps:$4 sm:$0xff]  }
 0x251   :  { %1961 = vmatprep.subr.bf16.mxu1 %v2695_v60  ;;  %v2754_v60 = vld [vmem:[%s3660_s7 + $0x208] ss:$28 sps:$4 sm:$0xff]  }
 0x254   :  { %1962 = vmatpush2.bf16.msra.mxu1 %v2693_v62  ;;  %v2757_v62 = vld [vmem:[%s3660_s7 + $0x1d0] ss:$28 sps:$4 sm:$0xff]   ;;  %s2811_s7 = smov [#allocation2]  }
 0x255   :  { %2389 = vmatprep.subr.bf16.mxu1 %v2699_v0  ;;  %v1277_v0 = vld [vmem:[%s3661_s8] sm:$0x7f]  ;;  %s2108_s8 = sshll.u32 %s2811_s7, 4  ;;  %s2109_s8 = int_to_ptr.vmem [resolvable:$true] %s2108_s8 }
 0x256   :  { %s2788_s13 = scalar_lea.vmem %s2109_s8, 896  ;;  %p2793_p1 = scmp.lt.s32.totalorder %s2109_s8, %s2109_s8 }
 0x257   :  { %p2789_p0 = scmp.ne.s32.totalorder %s2109_s8, %s2788_s13  ;;  %p2794_p2 = scmp.lt.s32.totalorder %s2788_s13, %s2788_s13 }
 0x259   :  { %p2795_p3 = por %p2794_p2, %p2793_p1 }
 0x25b   :  { %p2796_p4 = pnand %p2795_p3, %p2789_p0 }
 0x2d7   :  { %v1138_v4 = vpop.f32.mrf.mxu1 }
 0x2d8   :  { %v1139_v5 = vadd.f32 %v1138_v4, %v1017_v2  ;;  %v1282_v2 = vrot.slane %v1277_v0, %v3233_v16  ;;  %v1286_v4 = vrot.slane %v1277_v0, %v3239_v18 }
 0x2d9   :  { %v1140_v6 = vpop.f32.mrf.mxu1 }
 0x2da   :  { %v1141_v7 = vadd.f32 %v1140_v6, %v1021_v3  ;;  %v1145_v8 = vmax.f32 %v1139_v5, 0.0  ;;  %v1290_v3 = vrot.slane %v1277_v0, %v1289_v63  ;;  %v1294_v5 = vrot.slane %v1277_v0, %v1293_v1 }
 0x2db   :  { %v1142_v9 = vpop.f32.mrf.mxu1 }
 0x2dc   :  { %v1146_v10 = vmax.f32 %v1141_v7, 0.0  ;;  %v3501_v17 = vpack.c.bf16 %v1145_v8, %v1145_v8 }
 0x2dd   :  { %v1143_v11 = vpop.f32.mrf.mxu1 }
 0x2de   :  { %v1148_v12 = vpack.c.bf16 %v1146_v10, %v1146_v10 }
 0x2e0   :  { %1922 = vmatprep.mubr.bf16.mxu0 %v1148_v12  ;;  %1963 = vmatprep.mubr.bf16.mxu1 %v1148_v12 }
 0x2e1   :  { %1923 = vmatmul.mubr.bf16.vlgmr.msra.gmra.mxu0 %v3501_v17  ;;  %1964 = vmatmul.mubr.bf16.vlgmr.msra.gmra.mxu1 %v3501_v17 }
 0x2e2   :  { %1973 = vmatpush1.bf16.msra.mxu0 %v2696_v13  ;;  %2390 = vmatpush3.bf16.msra.mxu1 %v2700_v14 }
 0x2e3   :  { %2004 = vmatprep.mubr.bf16.mxu0 %v1148_v12  ;;  %2045 = vmatprep.mubr.bf16.mxu1 %v1148_v12 }
 0x2e4   :  { %1974 = vmatprep.subr.bf16.mxu0 %v2703_v20  ;;  %2391 = vmatprep.subr.bf16.mxu1 %v2704_v21 }
 0x2e6   :  { %1975 = vmatpush1.bf16.msra.mxu0 %v2701_v22  ;;  %2392 = vmatpush3.bf16.msra.mxu1 %v2705_v23 }
 0x2e7   :  { %1976 = vmatprep.subr.bf16.mxu0 %v2708_v24  ;;  %2393 = vmatprep.subr.bf16.mxu1 %v2709_v25 }
 0x2ea   :  { %1977 = vmatpush1.bf16.msra.mxu0 %v2706_v26  ;;  %2394 = vmatpush3.bf16.msra.mxu1 %v2710_v27 }
 0x2eb   :  { %1978 = vmatprep.subr.bf16.mxu0 %v2713_v28  ;;  %2395 = vmatprep.subr.bf16.mxu1 %v2714_v29 }
 0x2ee   :  { %1979 = vmatpush1.bf16.msra.mxu0 %v2711_v30  ;;  %2396 = vmatpush3.bf16.msra.mxu1 %v2715_v31 }
 0x2ef   :  { %1980 = vmatprep.subr.bf16.mxu0 %v2718_v32  ;;  %2397 = vmatprep.subr.bf16.mxu1 %v2719_v33  ;;  %v1305_v32 = vsub.s32 6, %v3230_v15 }
 0x2f2   :  { %1981 = vmatpush1.bf16.msra.mxu0 %v2716_v34  ;;  %2398 = vmatpush3.bf16.msra.mxu1 %v2720_v35  ;;  %v1306_v34 = vrot.slane %v1277_v0, %v1305_v32 }
 0x2f3   :  { %1982 = vmatprep.subr.bf16.mxu0 %v2723_v36  ;;  %2399 = vmatprep.subr.bf16.mxu1 %v2724_v37 }
 0x2f6   :  { %1983 = vmatpush1.bf16.msra.mxu0 %v2721_v38  ;;  %2400 = vmatpush3.bf16.msra.mxu1 %v2725_v39 }
 0x2f7   :  { %1984 = vmatprep.subr.bf16.mxu0 %v2728_v40  ;;  %2401 = vmatprep.subr.bf16.mxu1 %v2729_v41 }
 0x2fa   :  { %1985 = vmatpush1.bf16.msra.mxu0 %v2726_v42  ;;  %2402 = vmatpush3.bf16.msra.mxu1 %v2730_v43 }
 0x2fb   :  { %1986 = vmatprep.subr.bf16.mxu0 %v2733_v19  ;;  %2403 = vmatprep.subr.bf16.mxu1 %v2734_v44 }
 0x2fe   :  { %1987 = vmatpush1.bf16.msra.mxu0 %v2731_v45  ;;  %2404 = vmatpush3.bf16.msra.mxu1 %v2735_v46  ;;  %v1297_v46 = vsub.s32 4, %v3230_v15 }
 0x2ff   :  { %1988 = vmatprep.subr.bf16.mxu0 %v2738_v47  ;;  %v1301_v47 = vsub.s32 5, %v3230_v15 }
 0x301   :  { %2046 = vmatmul.mubr.bf16.vlgmr.msra.gmra.mxu1 %v3501_v17 }
 0x302   :  { %1989 = vmatpush2.bf16.msra.mxu0 %v2736_v48  ;;  %v1298_v48 = vrot.slane %v1277_v0, %v1297_v46 }
 0x303   :  { %1990 = vmatprep.subr.bf16.mxu0 %v2741_v49  ;;  %v1302_v49 = vrot.slane %v1277_v0, %v1301_v47 }
 0x306   :  { %1991 = vmatpush2.bf16.msra.mxu0 %v2739_v50 }
 0x307   :  { %1992 = vmatprep.subr.bf16.mxu0 %v2744_v51 }
 0x30a   :  { %1993 = vmatpush2.bf16.msra.mxu0 %v2742_v52 }
 0x30b   :  { %1994 = vmatprep.subr.bf16.mxu0 %v2747_v53 }
 0x30e   :  { %1995 = vmatpush2.bf16.msra.mxu0 %v2745_v54 }
 0x30f   :  { %1996 = vmatprep.subr.bf16.mxu0 %v2750_v55 }
 0x312   :  { %1997 = vmatpush2.bf16.msra.mxu0 %v2748_v56 }
 0x313   :  { %1998 = vmatprep.subr.bf16.mxu0 %v2753_v57 }
 0x316   :  { %1999 = vmatpush2.bf16.msra.mxu0 %v2751_v58 }
 0x317   :  { %2000 = vmatprep.subr.bf16.mxu0 %v2756_v59 }
 0x31a   :  { %2001 = vmatpush2.bf16.msra.mxu0 %v2754_v60 }
 0x31b   :  { %2002 = vmatprep.subr.bf16.mxu0 %v2759_v61 }
 0x31e   :  { %2003 = vmatpush2.bf16.msra.mxu0 %v2757_v62 }
 0x321   :  { %2005 = vmatmul.mubr.bf16.vlgmr.msra.gmra.mxu0 %v3501_v17 }
 0x3a1   :  { %v1924_v6 = vpop.f32.mrf.mxu0  ;;  %v1965_v7 = vpop.f32.mrf.mxu1 }
 0x3a2   :  { %v1925_v8 = vadd.f32 %v1924_v6, %v1282_v2  ;;  %v1966_v9 = vadd.f32 %v1965_v7, %v1290_v3 }
 0x3a3   :  { %v1926_v10 = vpop.f32.mrf.mxu0  ;;  %v1967_v11 = vpop.f32.mrf.mxu1 }
 0x3a4   :  { %v2360_v12 = vmul.f32 -1.442695, %v1925_v8  ;;  %v2362_v13 = vmul.f32 -1.442695, %v1966_v9  ;;  %v1927_v14 = vadd.f32 %v1926_v10, %v1286_v4  ;;  %v1968_v17 = vadd.f32 %v1967_v11, %v1294_v5 }
 0x3a5   :  { %v1928_v20 = vpop.f32.mrf.mxu0  ;;  %v1969_v21 = vpop.f32.mrf.mxu1 }
 0x3a6   :  { %2760 = vpow2.f32 %v2360_v12  ;;  %v2361_v22 = vmul.f32 -1.442695, %v1927_v14  ;;  %v2363_v23 = vmul.f32 -1.442695, %v1968_v17 }
 0x3a7   :  { %2762 = vpow2.f32 %v2362_v13  ;;  %v1929_v16 = vpop.f32.mrf.mxu0  ;;  %v1970_v24 = vpop.f32.mrf.mxu1 }
 0x3a8   :  { %2764 = vpow2.f32 %v2361_v22 }
 0x3a9   :  { %2766 = vpow2.f32 %v2363_v23 }
 0x3b3   :  { %v2761_v18 = vpop.eup %2760 }
 0x3b4   :  { %v2763_v25 = vpop.eup %2762  ;;  %v2074_v26 = vadd.f32 1.0, %v2761_v18 }
 0x3b5   :  { %v2765_v27 = vpop.eup %2764  ;;  %v2076_v28 = vadd.f32 1.0, %v2763_v25 }
 0x3b6   :  { %v2767_v29 = vpop.eup %2766  ;;  %2768 = vrcp.f32 %v2074_v26  ;;  %v2075_v30 = vadd.f32 1.0, %v2765_v27 }
 0x3b7   :  { %2770 = vrcp.f32 %v2076_v28  ;;  %v2077_v31 = vadd.f32 1.0, %v2767_v29 }
 0x3b8   :  { %2772 = vrcp.f32 %v2075_v30 }
 0x3b9   :  { %2774 = vrcp.f32 %v2077_v31 }
 0x3c1   :  { %v2405_v33 = vpop.f32.mrf.mxu1 }
 0x3c3   :  { %v2769_v35 = vpop.eup %2768  ;;  %v2406_v36 = vpop.f32.mrf.mxu1 }
 0x3c4   :  { %v2771_v37 = vpop.eup %2770  ;;  %2095 = vst [vmem:[#allocation2] sm:$0xff] %v2769_v35  ;;  %v2407_v38 = vadd.f32 %v2406_v36, %v2405_v33 }
 0x3c5   :  { %v2773_v39 = vpop.eup %2772  ;;  %2097 = vst [vmem:[#allocation2 + $0x10] sm:$0xff] %v2771_v37  ;;  %v2408_v40 = vpop.f32.mrf.mxu1 }
 0x3c6   :  { %v2775_v41 = vpop.eup %2774  ;;  %2096 = vst [vmem:[#allocation2 + $0x8] sm:$0xff] %v2773_v39  ;;  %v2048_v42 = vadd.f32 %v2407_v38, %v1306_v34 }
 0x3c7   :  { %2098 = vst [vmem:[#allocation2 + $0x18] sm:$0xff] %v2775_v41  ;;  %v2409_v43 = vpop.f32.mrf.mxu1 }
 0x3c8   :  { %v2366_v19 = vmul.f32 -1.442695, %v2048_v42 }
 0x3ca   :  { %2776 = vpow2.f32 %v2366_v19 }
 0x3d7   :  { %v2777_v44 = vpop.eup %2776 }
 0x3d8   :  { %v2080_v45 = vadd.f32 1.0, %v2777_v44 }
 0x3da   :  { %2778 = vrcp.f32 %v2080_v45 }
 0x3e1   :  { %v2006_v50 = vpop.f32.mrf.mxu0 }
 0x3e2   :  { %v2007_v51 = vadd.f32 %v2006_v50, %v1298_v48 }
 0x3e3   :  { %v2008_v52 = vpop.f32.mrf.mxu0 }
 0x3e4   :  { %v2364_v53 = vmul.f32 -1.442695, %v2007_v51  ;;  %v2009_v54 = vadd.f32 %v2008_v52, %v1302_v49 }
 0x3e5   :  { %v2010_v55 = vpop.f32.mrf.mxu0 }
 0x3e6   :  { %2780 = vpow2.f32 %v2364_v53  ;;  %v2365_v56 = vmul.f32 -1.442695, %v2009_v54 }
 0x3e7   :  { %v2779_v57 = vpop.eup %2778  ;;  %v2011_v58 = vpop.f32.mrf.mxu0 }
 0x3e8   :  { %2101 = vst.msk [vmem:[#allocation2 + $0x30] sm:$0xff] %vm648_vm0, %v2779_v57  ;;  %2782 = vpow2.f32 %v2365_v56 }
 0x3f3   :  { %v2781_v59 = vpop.eup %2780 }
 0x3f4   :  { %v2078_v60 = vadd.f32 1.0, %v2781_v59 }
 0x3f5   :  { %v2783_v61 = vpop.eup %2782 }
 0x3f6   :  { %2784 = vrcp.f32 %v2078_v60  ;;  %v2079_v15 = vadd.f32 1.0, %v2783_v61 }
 0x3f8   :  { %2786 = vrcp.f32 %v2079_v15 }
 0x403   :  { %v2785_v62 = vpop.eup %2784 }
 0x404   :  { %2099 = vst [vmem:[#allocation2 + $0x20] sm:$0xff] %v2785_v62 }
 0x405   :  { %v2787_v63 = vpop.eup %2786 }
 0x406   :  { %2100 = vst [vmem:[#allocation2 + $0x28] sm:$0xff] %v2787_v63 }
 0x407   :  { %2799 = shalt.err (!%p2796_p4)
}
 0x408   :  { %2111 = dma.vmem_to_hbm [thread:$0]  %s2109_s8, 896, %s3662_s9, [#allocation3]  }
 0x409   :  { %2808 = dma.done.wait [#allocation3], 896  }
 0x40a   :  { %2809 = vsyncadd [#allocation3], 4294966400 }
 0x40b   :  { %2115 = vsyncpa [#allocation3], 1 }

</bundles_post_ra>
